<compile_context>
chip_gen: v7x
topology: tpu7x:2x2x1
jax: 0.10.0
libtpu: 0.0.40
codegen_flags: <defaults>
</compile_context>

<pallas_src>
import jax
import jax.numpy as jnp
from jax import lax
from jax.experimental import pallas as pl
from jax.experimental.pallas import tpu as pltpu


def _round_up(v, m):
    return (v + m - 1) // m * m


def _vmem_limit_bytes():
    """Scoped-VMEM budget: half of physical VMEM, capped at 64 MiB.
    -> 64 MiB on v5e/v6e (128 MiB physical), 32 MiB on v7x (64 MiB physical),
    conservative 32 MiB if the query is unavailable."""
    try:
        cap = int(pltpu.get_tpu_info().vmem_capacity_bytes)
    except Exception:
        cap = 64 * 1024 * 1024
    return min(64 * 1024 * 1024, cap // 2)


def _pick_tile(dim, align, cap):
    """Tile for one dim: the full dim if it fits under the cap (no padding,
    allowed because block == full array dim), otherwise the largest multiple
    of `align` <= cap that exactly divides the aligned dim (padding is then
    only up to the 8/128 alignment, never up to the tile size)."""
    if dim <= cap:
        return dim, dim
    aligned = _round_up(dim, align)
    best = align
    t = align
    while t <= cap:
        if aligned % t == 0:
            best = t
        t += align
    return best, aligned


def _tile_vmem_bytes(tm, tn, tk, itemsize):
    # Double-buffered input/output tiles + one f32 accumulator, each tile
    # rounded up to the (8, 128) VMEM layout.
    tm8, tk8 = _round_up(tm, 8), _round_up(tk, 8)
    tn128, tk128 = _round_up(tn, 128), _round_up(tk, 128)
    x_t = tm8 * tk128
    w_t = tk8 * tn128
    b_t = 8 * tn128
    o_t = tm8 * tn128
    return itemsize * 2 * (x_t + w_t + b_t + o_t) + 4 * o_t


def _choose_tiles(B, F_in, F_out, itemsize, vmem_limit):
    budget = int(vmem_limit * 0.75)  # headroom for compiler scratch
    tm_cap, tn_cap, tk_cap = 512, 2048, 2048
    while True:
        tm, B_a = _pick_tile(B, 8, tm_cap)
        tn, Fo_a = _pick_tile(F_out, 128, tn_cap)
        tk, Fi_a = _pick_tile(F_in, 128, tk_cap)
        if _tile_vmem_bytes(tm, tn, tk, itemsize) <= budget:
            break
        if tk_cap >= tn_cap and tk_cap > 128:
            tk_cap //= 2
        elif tn_cap > 128:
            tn_cap //= 2
        elif tm_cap > 8:
            tm_cap //= 2
        else:
            break  # smallest legal tiles
    # Megacore (v7x has 2 TensorCores): make sure at least one "parallel" grid
    # axis has >= 2 blocks when that is cheap and stays layout-legal.
    if B_a // tm == 1 and Fo_a // tn == 1:
        if tn % 256 == 0:
            tn //= 2
        elif tm % 16 == 0:
            tm //= 2
    return tm, tn, tk, B_a, Fo_a, Fi_a


# ----------------------------- kernels ---------------------------------------


def _linear_small_kernel(x_ref, w_ref, b_ref, o_ref):
    # Whole problem in one VMEM block: x @ W^T + b. Contraction over the
    # in_features axis of both operands (PyTorch weight layout as-is).
    acc = lax.dot_general(
        x_ref[...], w_ref[...],
        dimension_numbers=(((1,), (1,)), ((), ())),
        preferred_element_type=jnp.float32,
    )
    o_ref[...] = (acc + b_ref[...]).astype(o_ref.dtype)


def _linear_tiled_kernel(x_ref, wt_ref, b_ref, o_ref, acc_ref):
    # x_ref:   (tm, tk)  input tile
    # wt_ref:  (tk, tn)  weight tile, pre-transposed to (in, out) layout so the
    #                    MXU consumes it directly (no per-tile XLU transpose).
    # b_ref:   (1, tn)   bias tile (f32), indexed by the N grid axis only
    # o_ref:   (tm, tn)  output tile
    # acc_ref: (tm, tn)  f32 accumulator, resident across the K grid axis
    k = pl.program_id(2)

    @pl.when(k == 0)
    def _():
        # Initialize with the broadcast bias: removes the epilogue VPU add.
        acc_ref[...] = jnp.broadcast_to(
            b_ref[...].astype(jnp.float32), acc_ref.shape)

    acc_ref[...] += jnp.dot(
        x_ref[...], wt_ref[...], preferred_element_type=jnp.float32)

    @pl.when(k == pl.num_programs(2) - 1)
    def _():
        o_ref[...] = acc_ref[...].astype(o_ref.dtype)


# ----------------------------- wrapper ----------------------------------------

_SMALL_PATH_BYTES = 2 * 1024 * 1024  # single-block fast-path threshold


def linear_regression_forward(x, weight, bias):
    """y = x @ weight.T + bias  (torch.nn.Linear semantics) via Pallas on TPU.

    x:      (B, F_in)      float32
    weight: (F_out, F_in)  float32  (PyTorch nn.Linear layout)
    bias:   (F_out,)       float32
    """
    B, F_in = x.shape
    F_out, F_in_w = weight.shape
    assert F_in == F_in_w and bias.shape == (F_out,)
    itemsize = x.dtype.itemsize
    bias_f32 = bias.astype(jnp.float32)

    # ---- Fast path: whole problem fits in one VMEM block (no grid, no pads,
    # no accumulator, bias added inline). Covers the shipped 8x32 case.
    footprint = itemsize * (
        _round_up(B, 8) * _round_up(F_in, 128)
        + _round_up(F_out, 8) * _round_up(F_in, 128)
        + _round_up(B, 8) * _round_up(F_out, 128)
        + 8 * _round_up(F_out, 128))
    if footprint <= _SMALL_PATH_BYTES:
        return pl.pallas_call(
            _linear_small_kernel,
            out_shape=jax.ShapeDtypeStruct((B, F_out), x.dtype),
        )(x, weight, bias_f32.reshape(1, F_out))

    # ---- Tiled path.
    vmem_limit = _vmem_limit_bytes()
    tm, tn, tk, B_a, Fo_a, Fi_a = _choose_tiles(
        B, F_in, F_out, itemsize, vmem_limit)

    # One transpose of W to (in, out) layout in HBM; amortized over the
    # B_a/tm-fold re-streaming of W across the M axis, and keeps XLU transposes
    # out of the MXU-push (vector-extended) slots.
    w_t = weight.T

    # Only alignment padding, if any (tiles are full dims or exact divisors of
    # the aligned dims, so this is usually skipped entirely).
    if (B_a, Fi_a) != (B, F_in):
        x = jnp.pad(x, ((0, B_a - B), (0, Fi_a - F_in)))
    if (Fi_a, Fo_a) != (F_in, F_out):
        w_t = jnp.pad(w_t, ((0, Fi_a - F_in), (0, Fo_a - F_out)))
    if Fo_a != F_out:
        bias_f32 = jnp.pad(bias_f32, (0, Fo_a - F_out))
    bias2d = bias_f32.reshape(1, Fo_a)

    grid = (B_a // tm, Fo_a // tn, Fi_a // tk)
    n_i, n_j, _ = grid

    out = pl.pallas_call(
        _linear_tiled_kernel,
        out_shape=jax.ShapeDtypeStruct((B_a, Fo_a), x.dtype),
        grid=grid,
        in_specs=[
            pl.BlockSpec((tm, tk), lambda i, j, k: (i, k)),   # x
            pl.BlockSpec((tk, tn), lambda i, j, k: (k, j)),   # W^T (in, out)
            pl.BlockSpec((1, tn), lambda i, j, k: (0, j)),    # bias
        ],
        out_specs=pl.BlockSpec((tm, tn), lambda i, j, k: (i, j)),
        scratch_shapes=[pltpu.VMEM((tm, tn), jnp.float32)],
        compiler_params=pltpu.CompilerParams(
            dimension_semantics=("parallel", "parallel", "arbitrary"),
            vmem_limit_bytes=vmem_limit,
        ),
        cost_estimate=pl.CostEstimate(
            flops=2 * B_a * Fo_a * Fi_a,
            transcendentals=0,
            # Account for re-streaming: x is read once per N block, W once per
            # M block.
            bytes_accessed=itemsize * (n_j * B_a * Fi_a + n_i * Fi_a * Fo_a
                                       + B_a * Fo_a) + 4 * Fo_a,
        ),
    )(x, w_t, bias2d)

    if (B_a, Fo_a) != (B, F_out):
        out = out[:B, :F_out]
    return out


if __name__ == "__main__":
    key = jax.random.PRNGKey(0)

    # --- Shipped module configuration: nn.Linear(num_param, num_param). ------
    num_param = 32
    batch = 8
    kx, kw, kb, kx2, kw2, kb2 = jax.random.split(key, 6)

    x = jax.random.normal(kx, (batch, num_param), dtype=jnp.float32)
    weight = jax.random.normal(kw, (num_param, num_param), dtype=jnp.float32) * 0.1
    bias = jax.random.normal(kb, (num_param,), dtype=jnp.float32) * 0.1

    out = jax.block_until_ready(linear_regression_forward(x, weight, bias))
    ref = jnp.dot(x, weight.T, precision="highest") + bias
    assert out.shape == (batch, num_param)
    assert jnp.allclose(out, ref, atol=1e-3, rtol=1e-3)

    # --- Also exercise the tiled path once (modest shape, runs in ms). -------
    B2, F2 = 520, 640
    x2 = jax.random.normal(kx2, (B2, F2), dtype=jnp.float32)
    w2 = jax.random.normal(kw2, (F2, F2), dtype=jnp.float32) * 0.05
    b2 = jax.random.normal(kb2, (F2,), dtype=jnp.float32) * 0.05

    out2 = jax.block_until_ready(linear_regression_forward(x2, w2, b2))
    ref2 = jnp.dot(x2, w2.T, precision="highest") + b2
    assert out2.shape == (B2, F2)
    assert jnp.allclose(out2, ref2, atol=1e-3, rtol=1e-3)

    print("KERNEL_OK")
</pallas_src>

<mosaic_0001>
module attributes {stable_mosaic.version = 11 : i64} {
  func.func @_linear_small_kernel(%arg0: memref<8x32xf32, #tpu.memory_space<vmem>>, %arg1: memref<32x32xf32, #tpu.memory_space<vmem>>, %arg2: memref<1x32xf32, #tpu.memory_space<vmem>>, %arg3: memref<8x32xf32, #tpu.memory_space<vmem>>) attributes {dimension_semantics = [], scalar_prefetch = 0 : i64, scratch_operands = 0 : i64, tpu.core_type = #tpu.core_type<tc>} {
    %c0 = arith.constant 0 : index
    %c0_0 = arith.constant 0 : index
    %0 = vector.load %arg0[%c0, %c0_0] : memref<8x32xf32, #tpu.memory_space<vmem>>, vector<8x32xf32>
    %c0_1 = arith.constant 0 : index
    %c0_2 = arith.constant 0 : index
    %1 = vector.load %arg1[%c0_1, %c0_2] : memref<32x32xf32, #tpu.memory_space<vmem>>, vector<32x32xf32>
    %cst = arith.constant dense<0.000000e+00> : vector<8x32xf32>
    %2 = tpu.matmul %0, %1, %cst {dimension_numbers = #tpu.dot_dimension_numbers<[1], [1], [0], [0], [0, 0, 1, 0], [], []>} : vector<8x32xf32>, vector<32x32xf32>, vector<8x32xf32> -> vector<8x32xf32>
    %c0_3 = arith.constant 0 : index
    %c0_4 = arith.constant 0 : index
    %3 = vector.load %arg2[%c0_3, %c0_4] : memref<1x32xf32, #tpu.memory_space<vmem>>, vector<1x32xf32>
    %4 = vector.broadcast %3 : vector<1x32xf32> to vector<8x32xf32>
    %5 = arith.addf %2, %4 : vector<8x32xf32>
    %c0_5 = arith.constant 0 : index
    %c0_6 = arith.constant 0 : index
    %6 = vector.load %arg3[%c0_5, %c0_6] : memref<8x32xf32, #tpu.memory_space<vmem>>, vector<8x32xf32>
    tpu.vector_store %arg3[%c0_5, %c0_6], %5 {strides = array<i32>} : memref<8x32xf32, #tpu.memory_space<vmem>>, vector<8x32xf32>,
    return
  }
}

</mosaic_0001>

<bundles_post_ra>
// kernel: tpu_custom_call.1
= control target key start
LH: loop header
LB: loop body
LE: loop exit
PB: predicated region body
PF: predicated region fallthrough
CT: control target
= control target key end

     0   :  { %8 = vsyncpa [#allocation3], 0  ;;  %s344_s0 = inlined_call_operand.hbm [shape: f32[8,32], index: 0, kind: input, shape index: {}]   ;;  %s345_s1 = inlined_call_operand.hbm [shape: f32[32,32], index: 1, kind: input, shape index: {}]   ;;  %s346_s2 = inlined_call_operand.vmem [shape: f32[1,32], index: 2, kind: input, shape index: {}]   ;;  %s347_s3 = inlined_call_operand.hbm [shape: f32[8,32], index: 3, kind: output, shape index: {}]  }
   0x1   :  { %9 = vsyncpa [#allocation6], 0 }
   0x2   :  { %10 = vsyncpa [#allocation4], 0  ;;  %s266_s12 = smov [#allocation2]   ;;  %s267_s14 = smov [#allocation5]  }
   0x3   :  { %s17_s13 = sshll.u32 %s266_s12, 4  ;;  %s26_s15 = sshll.u32 %s267_s14, 4  ;;  %s18_s13 = int_to_ptr.vmem [resolvable:$true] %s17_s13  ;;  %s294_s15 = int_to_ptr.vmem [resolvable:$true] %s26_s15 }
   0x4   :  { %s194_s18 = scalar_lea.hbm %s344_s0, 128 }
   0x5   :  { %p195_p0 = scmp.ne.s32.totalorder %s344_s0, %s194_s18  ;;  %p198_p1 = scmp.lt.u32.totalorder %s194_s18, %s344_s0 }
   0x7   :  { %p200_p2 = pnand %p198_p1, %p195_p0 }
   0x9   :  { %203 = shalt.err (!%p200_p2)
}
   0xa   :  { %s204_s23 = scalar_lea.vmem %s18_s13, 128  ;;  %p209_p4 = scmp.lt.s32.totalorder %s18_s13, %s18_s13 }
   0xb   :  { %p205_p3 = scmp.ne.s32.totalorder %s18_s13, %s204_s23  ;;  %p210_p5 = scmp.lt.s32.totalorder %s204_s23, %s204_s23 }
   0xd   :  { %p211_p6 = por %p210_p5, %p209_p4 }
   0xf   :  { %p212_p7 = pnand %p211_p6, %p205_p3 }
  0x11   :  { %215 = shalt.err (!%p212_p7)
}
  0x12   :  { %20 = dma.hbm_to_vmem [thread:$0]  %s344_s0, 128, %s18_s13, [#allocation3]  }
  0x13   :  { %s216_s28 = scalar_lea.hbm %s345_s1, 512 }
  0x14   :  { %p217_p8 = scmp.ne.s32.totalorder %s345_s1, %s216_s28  ;;  %p220_p9 = scmp.lt.u32.totalorder %s216_s28, %s345_s1 }
  0x16   :  { %p222_p10 = pnand %p220_p9, %p217_p8 }
  0x18   :  { %225 = shalt.err (!%p222_p10)
}
  0x19   :  { %s226_s6 = scalar_lea.vmem %s294_s15, 512  ;;  %p231_p12 = scmp.lt.s32.totalorder %s294_s15, %s294_s15 }
  0x1a   :  { %p227_p11 = scmp.ne.s32.totalorder %s294_s15, %s226_s6  ;;  %p232_p13 = scmp.lt.s32.totalorder %s226_s6, %s226_s6 }
  0x1c   :  { %p233_p0 = por %p232_p13, %p231_p12 }
  0x1e   :  { %p234_p1 = pnand %p233_p0, %p227_p11 }
  0x20   :  { %237 = shalt.err (!%p234_p1)
}
  0x21   :  { %s268_s0 = smov 128   ;;  %s269_s7 = smov 8  }
  0x22   :  { %32 = dma.hbm_to_vmem [thread:$0]  %s345_s1, 512, %s294_s15, [#allocation6], %s268_s0, %s268_s0, %s269_s7  }
  0x23   :  { %260 = dma.done.wait [#allocation3], 128  }
  0x24   :  { %261 = vsyncadd [#allocation3], 4294967168 }
  0x25   :  { %262 = dma.done.wait [#allocation6], 512  }
  0x26   :  { %263 = vsyncadd [#allocation6], 4294966784  ;;  %v270_v0 = vmov 0.0|0.0   ;;  %vm271_vm0 = vmmov 0   ;;  %v272_v1 = vmov 0.0   ;;  %vm53_vm1 = vcmask 261120  }
  0x27   :  { %178 = vmatprep.subr.bf16.mxu0 %v270_v0  ;;  %175 = vmatprep.mubr.msk.f32.mxu0 %vm271_vm0, %v272_v1  ;;  %v42_v2 = vld [vmem:[#allocation5] sm:$0xff]  ;;  %v43_v3 = vld [vmem:[#allocation5 + $0x8] sm:$0xff]  ;;  %vm180_vm2 = vmpackc.low %vm53_vm1, %vm53_vm1  ;;  %s273_s11 = smov [#allocation7]  }
  0x28   :  { %v179_v4 = vpack.c.bf16 %v43_v3, %v42_v2  ;;  %v44_v5 = vld [vmem:[#allocation5 + $0x10] sm:$0xff]  ;;  %v45_v6 = vld [vmem:[#allocation5 + $0x18] sm:$0xff]  ;;  %s146_s12 = sshll.u32 %s273_s11, 4  ;;  %s147_s12 = int_to_ptr.vmem [resolvable:$true] %s146_s12 }
  0x29   :  { %v183_v7 = vpack.c.bf16 %v45_v6, %v44_v5  ;;  %v41_v8 = vld [vmem:[#allocation2] sm:$0xff]  ;;  %s238_s13 = scalar_lea.vmem %s147_s12, 128  ;;  %p243_p3 = scmp.lt.s32.totalorder %s147_s12, %s147_s12 }
  0x2a   :  { %181 = vmatpush3.bf16.xpose.msk.msra.mxu0 %vm180_vm2, %v179_v4  ;;  %v156_v9 = vld [vmem:[%s346_s2] ss:$0 sm:$0xff]  ;;  %p239_p2 = scmp.ne.s32.totalorder %s147_s12, %s238_s13  ;;  %p244_p4 = scmp.lt.s32.totalorder %s238_s13, %s238_s13 }
  0x2b   :  { %182 = vmatprep.subr.bf16.mxu0 %v270_v0 }
  0x2c   :  { %p245_p5 = por %p244_p4, %p243_p3 }
  0x2e   :  { %p246_p6 = pnand %p245_p5, %p239_p2 }
  0x32   :  { %185 = vmatpush3.bf16.xpose.msk.msra.mxu0 %vm180_vm2, %v183_v7 }
  0x39   :  { %176 = vmatmul.mubr.msk.f32.vlgmr.msra.gmra.mrb[0].mxu0 %vm53_vm1, %v41_v8 }
 0x10c   :  { %v135_v10 = vpop.f32.mrb[0].mxu0 }
 0x10d   :  { %v136_v11 = vadd.f32 %v156_v9, %v135_v10  ;;  %v177_v12 = vpop.f32.mrb[1].mxu0 }
 0x10f   :  { %139 = vst.msk [vmem:[#allocation7] sm:$0xff] %vm53_vm1, %v136_v11 }
 0x110   :  { %249 = shalt.err (!%p246_p6)
}
 0x111   :  { %s250_s16 = scalar_lea.hbm %s347_s3, 128 }
 0x112   :  { %p251_p7 = scmp.ne.s32.totalorder %s347_s3, %s250_s16  ;;  %p254_p8 = scmp.lt.u32.totalorder %s250_s16, %s347_s3 }
 0x114   :  { %p256_p9 = pnand %p254_p8, %p251_p7 }
 0x116   :  { %259 = shalt.err (!%p256_p9)
}
 0x117   :  { %149 = dma.vmem_to_hbm [thread:$0]  %s147_s12, 128, %s347_s3, [#allocation4]  }
 0x118   :  { %264 = dma.done.wait [#allocation4], 128  }
 0x119   :  { %265 = vsyncadd [#allocation4], 4294967168 }
 0x11a   :  { %153 = vsyncpa [#allocation3], 1 }
 0x11b   :  { %154 = vsyncpa [#allocation6], 1 }
 0x11c   :  { %155 = vsyncpa [#allocation4], 1 }

</bundles_post_ra>
